<compile_context>
chip_gen: v7x
topology: tpu7x:2x2x1
jax: 0.10.0
libtpu: 0.0.40
codegen_flags: <defaults>
</compile_context>

<pallas_src>
import jax
import jax.numpy as jnp
from jax import lax
from jax.experimental import pallas as pl
from jax.experimental.pallas import tpu as pltpu

_RSQRT2 = 0.7071067811865476
_BN_EPS = 1e-5
_MXU_DTYPE = jnp.bfloat16   # MXU-native operand dtype; accumulation stays f32.


# ---------------------------------------------------------------- Pallas kernel
def _make_conv_kernel(num_branches, cins, stride, Wph, Mfull, Cout):
    """Fused 3x3 conv (pad=1) + BatchNorm-affine + exact GELU, one image/step.

    Per branch b the kernel receives x_refs[b]: (1, S*S, Cin_b, L) — phase
    decomposed, padded, channel-major, spatially flattened input — plus
    w_ref (Cout, Ktot) bf16 (BN scale folded), bias_ref (Cout, 1) f32,
    out_ref (1, Cout, Mfull) and a (Ktot, Mfull) bf16 im2col scratch.

    Every tap is a contiguous lane slice of a phase plane (flat shift), staged
    once into the scratch; a single deep-K, lane-dense matmul then feeds the
    MXU and the epilogue stays lane-dense (no transpose, no reshape).
    """
    S = stride

    def kernel(*refs):
        x_refs = refs[:num_branches]
        w_ref = refs[num_branches]
        bias_ref = refs[num_branches + 1]
        out_ref = refs[num_branches + 2]
        cols_ref = refs[num_branches + 3]

        # Stage the K-packed im2col slab (pure slice copies, no relayout).
        k0 = 0
        for b in range(num_branches):
            cin = cins[b]
            for kh in range(3):
                for kw in range(3):
                    p = (kh % S) * S + (kw % S)            # phase plane
                    off = (kh // S) * Wph + (kw // S)      # uniform flat shift
                    cols_ref[k0:k0 + cin, :] = x_refs[b][0, p, :, off:off + Mfull]
                    k0 += cin

        # One deep-K matmul on the MXU; spatial (Mfull) on the output lanes.
        acc = jnp.dot(w_ref[...], cols_ref[...],
                      preferred_element_type=jnp.float32)     # (Cout, Mfull)
        y = acc + bias_ref[...]                               # fused BN bias
        y = 0.5 * y * (1.0 + lax.erf(y * _RSQRT2))            # exact GELU
        out_ref[0] = y.astype(out_ref.dtype)                  # lane-dense store

    return kernel


# ------------------------------------------------------------------- JAX glue
def _phase_flatten(x_nchw, stride, Hph, Wph):
    """Pad (pad=1), stride-phase-decompose, flatten — channel-major.

    Returns (N, S*S, C, Hph*Wph + extra) such that tap (kh, kw) of the 3x3
    stride-S conv evaluated on the full (Hph, Wph) output grid is the
    contiguous lane slice
      [:, (kh%S)*S + (kw%S), :, off : off + Hph*Wph],  off = (kh//S)*Wph + kw//S.
    Total HBM traffic is 1x the feature map (no im2col amplification).
    """
    N, C, H, W = x_nchw.shape
    S = stride
    Hp, Wp = S * Hph, S * Wph
    xp = jnp.pad(x_nchw, ((0, 0), (0, 0), (1, Hp - H - 1), (1, Wp - W - 1)))
    planes = [xp[:, :, ph::S, pw::S] for ph in range(S) for pw in range(S)]
    phases = jnp.stack(planes, axis=1)                 # (N, S*S, C, Hph, Wph)
    flat = phases.reshape(N, S * S, C, Hph * Wph)      # free (contiguous)
    extra = (2 // S) * Wph + (2 // S)                  # headroom for max shift
    return jnp.pad(flat, ((0, 0), (0, 0), (0, 0), (0, extra)))


def _conv3x3_bn_gelu(xs_nchw, weights, bn, *, stride, out_dtype):
    """BasicConv(k=3, pad=1, bias=False, bn=True, gelu=True) on the (virtual)
    channel-concat of `xs_nchw` with matching weight slices.  NCHW in / out."""
    gamma, beta, mean, var = bn
    scale = gamma / jnp.sqrt(var + _BN_EPS)
    bias = (beta - mean * scale).reshape(-1, 1).astype(jnp.float32)

    S = stride
    Cout = weights[0].shape[0]
    N, _, H, W = xs_nchw[0].shape
    Ho = (H + 2 - 3) // S + 1
    Wo = (W + 2 - 3) // S + 1
    Hph = Ho + (2 // S)        # padded output grid so every tap shift fits
    Wph = Wo + (2 // S)
    Mfull = Hph * Wph          # kernel computes on the full padded grid

    flats, wms, cins = [], [], []
    for x, w in zip(xs_nchw, weights):
        cin = x.shape[1]
        cins.append(cin)
        flats.append(_phase_flatten(x.astype(_MXU_DTYPE), S, Hph, Wph))
        # (Cout, Cin, 3, 3) -> (Cout, kh, kw, Cin) -> (Cout, 9*Cin); K order
        # matches the in-kernel staging loop.  BN scale folded in f32.
        wm = jnp.transpose(w, (0, 2, 3, 1)).reshape(Cout, 9 * cin)
        wms.append(wm * scale[:, None])
    wbig = jnp.concatenate(wms, axis=1).astype(_MXU_DTYPE)
    Ktot = wbig.shape[1]

    kernel = _make_conv_kernel(len(xs_nchw), tuple(cins), S, Wph, Mfull, Cout)

    in_specs = []
    for f in flats:
        blk = (1,) + f.shape[1:]
        in_specs.append(pl.BlockSpec(blk, lambda n: (n, 0, 0, 0)))
    in_specs.append(pl.BlockSpec((Cout, Ktot), lambda n: (0, 0)))
    in_specs.append(pl.BlockSpec((Cout, 1), lambda n: (0, 0)))

    out_full = pl.pallas_call(
        kernel,
        out_shape=jax.ShapeDtypeStruct((N, Cout, Mfull), out_dtype),
        grid=(N,),
        in_specs=in_specs,
        out_specs=pl.BlockSpec((1, Cout, Mfull), lambda n: (n, 0, 0)),
        scratch_shapes=[pltpu.VMEM((Ktot, Mfull), _MXU_DTYPE)],
        compiler_params=pltpu.CompilerParams(
            dimension_semantics=("parallel",)),
    )(*flats, wbig, bias)

    # Free HBM reshape + cheap slice drops the padded-grid garbage columns.
    return out_full.reshape(N, Cout, Hph, Wph)[:, :, :Ho, :Wo]


def _nearest_resize_nchw(x, out_h, out_w):
    # Matches F.interpolate(mode='nearest'): src = floor(dst * in / out).
    N, C, H, W = x.shape
    hi = (jnp.arange(out_h) * H // out_h).astype(jnp.int32)
    wi = (jnp.arange(out_w) * W // out_w).astype(jnp.int32)
    return x[:, :, hi][:, :, :, wi]


def conv2x_forward(x_nchw, rem_nchw, params):
    """Conv2x.forward (deconv=False, is_3d=False, concat=True, keep_concat=True,
    bn=True, gelu=True) — NCHW in, NCHW out."""
    # conv1: 3x3 stride-2 conv + BN + GELU (downsample x2); bf16 intermediate.
    w1, g1, b1, m1, v1 = params["conv1"]
    y1 = _conv3x3_bn_gelu([x_nchw], [w1], (g1, b1, m1, v1),
                          stride=2, out_dtype=_MXU_DTYPE)

    if y1.shape[2:] != rem_nchw.shape[2:]:
        y1 = _nearest_resize_nchw(y1, rem_nchw.shape[2], rem_nchw.shape[3])

    # conv2: 3x3 stride-1 conv on concat([y1, rem], C) + BN + GELU.  The
    # concat is fused: conv2's weight is split along input channels and both
    # branches are staged into one im2col slab inside the kernel.
    w2, g2, b2, m2, v2 = params["conv2"]
    C1 = y1.shape[1]
    out = _conv3x3_bn_gelu([y1, rem_nchw], [w2[:, :C1], w2[:, C1:]],
                           (g2, b2, m2, v2), stride=1, out_dtype=jnp.float32)
    return out  # NCHW


# -------------------------------------------------------------- param helpers
def _init_bn_params(key, c):
    k1, k2, k3, k4 = jax.random.split(key, 4)
    gamma = jax.random.uniform(k1, (c,), jnp.float32, 0.5, 1.5)
    beta = 0.1 * jax.random.normal(k2, (c,), jnp.float32)
    mean = 0.1 * jax.random.normal(k3, (c,), jnp.float32)
    var = jax.random.uniform(k4, (c,), jnp.float32, 0.5, 1.5)
    return gamma, beta, mean, var


def init_conv2x_params(key, in_channels, out_channels):
    k1, k2, k3, k4 = jax.random.split(key, 4)
    # conv1: Conv2d(in_channels, out_channels, k=3, s=2, p=1, bias=False)
    w1 = 0.1 * jax.random.normal(k1, (out_channels, in_channels, 3, 3), jnp.float32)
    bn1 = _init_bn_params(k2, out_channels)
    # conv2: Conv2d(2*out_channels, 2*out_channels, k=3, s=1, p=1, bias=False)
    c2 = 2 * out_channels
    w2 = 0.1 * jax.random.normal(k3, (c2, c2, 3, 3), jnp.float32)
    bn2 = _init_bn_params(k4, c2)
    return {"conv1": (w1, *bn1), "conv2": (w2, *bn2)}


# ----------------------------------------------------------- pure-JAX reference
def _reference_basic_conv(x_nchw, params, *, stride):
    w, gamma, beta, mean, var = params
    y = lax.conv_general_dilated(
        x_nchw, w, window_strides=(stride, stride), padding=((1, 1), (1, 1)),
        dimension_numbers=("NCHW", "OIHW", "NCHW"),
        precision=lax.Precision.HIGHEST)
    scale = gamma / jnp.sqrt(var + _BN_EPS)
    bias = beta - mean * scale
    y = y * scale[None, :, None, None] + bias[None, :, None, None]
    return 0.5 * y * (1.0 + lax.erf(y * _RSQRT2))


def _reference_forward(x_nchw, rem_nchw, params):
    y = _reference_basic_conv(x_nchw, params["conv1"], stride=2)
    if y.shape[2:] != rem_nchw.shape[2:]:
        y = _nearest_resize_nchw(y, rem_nchw.shape[2], rem_nchw.shape[3])
    y = jnp.concatenate([y, rem_nchw], axis=1)
    return _reference_basic_conv(y, params["conv2"], stride=1)


# --------------------------------------------------------------------- driver
if __name__ == "__main__":
    key = jax.random.PRNGKey(0)
    kx, kr, kp = jax.random.split(key, 3)

    N, Cin, H, W = 2, 4, 16, 16
    Cout = 8

    x = jax.random.normal(kx, (N, Cin, H, W), jnp.float32)               # NCHW
    rem = jax.random.normal(kr, (N, Cout, H // 2, W // 2), jnp.float32)  # NCHW
    params = init_conv2x_params(kp, Cin, Cout)

    out = jax.jit(conv2x_forward)(x, rem, params)
    out = jax.block_until_ready(out)

    assert out.shape == (N, 2 * Cout, H // 2, W // 2), out.shape
    assert bool(jnp.all(jnp.isfinite(out)))

    # Cross-check against an XLA reference (bf16 MXU operands -> loose tol).
    ref = jax.block_until_ready(jax.jit(_reference_forward)(x, rem, params))
    err = float(jnp.max(jnp.abs(out - ref)))
    assert err < 1e-1, f"max abs err vs reference: {err}"

    print("KERNEL_OK")
</pallas_src>

<mosaic_0001>
module attributes {stable_mosaic.version = 11 : i64} {
  func.func @kernel(%arg0: i32, %arg1: memref<1x4x4x91xbf16, #tpu.memory_space<vmem>>, %arg2: memref<8x36xbf16, #tpu.memory_space<vmem>>, %arg3: memref<8x1xf32, #tpu.memory_space<vmem>>, %arg4: memref<1x8x81xbf16, #tpu.memory_space<vmem>>, %arg5: memref<36x81xbf16, #tpu.memory_space<vmem>>) attributes {dimension_semantics = [#tpu.dimension_semantics<parallel>], iteration_bounds = array<i64: 2>, scalar_prefetch = 0 : i64, scratch_operands = 1 : i64, tpu.core_type = #tpu.core_type<tc>, window_params = [{transform_indices = @transform_0, window_bounds = array<i64: 1, 4, 4, 91>}, {pipeline_mode = #tpu.pipeline_mode<synchronous>, transform_indices = @transform_1, window_bounds = array<i64: 8, 36>}, {pipeline_mode = #tpu.pipeline_mode<synchronous>, transform_indices = @transform_2, window_bounds = array<i64: 8, 1>}, {transform_indices = @transform_3, window_bounds = array<i64: 1, 8, 81>}]} {
    %c0 = arith.constant 0 : index
    %c0_0 = arith.constant 0 : index
    %c0_1 = arith.constant 0 : index
    %c0_2 = arith.constant 0 : index
    %0 = vector.load %arg1[%c0, %c0_0, %c0_1, %c0_2] : memref<1x4x4x91xbf16, #tpu.memory_space<vmem>>, vector<1x1x4x81xbf16>
    %1 = vector.shape_cast %0 : vector<1x1x4x81xbf16> to vector<4x81xbf16>
    %c0_3 = arith.constant 0 : index
    %c0_4 = arith.constant 0 : index
    %2 = vector.load %arg5[%c0_3, %c0_4] : memref<36x81xbf16, #tpu.memory_space<vmem>>, vector<4x81xbf16>
    tpu.vector_store %arg5[%c0_3, %c0_4], %1 {strides = array<i32>} : memref<36x81xbf16, #tpu.memory_space<vmem>>, vector<4x81xbf16>,
    %c0_5 = arith.constant 0 : index
    %c1 = arith.constant 1 : index
    %c0_6 = arith.constant 0 : index
    %c0_7 = arith.constant 0 : index
    %3 = vector.load %arg1[%c0_5, %c1, %c0_6, %c0_7] : memref<1x4x4x91xbf16, #tpu.memory_space<vmem>>, vector<1x1x4x81xbf16>
    %4 = vector.shape_cast %3 : vector<1x1x4x81xbf16> to vector<4x81xbf16>
    %c4 = arith.constant 4 : index
    %c0_8 = arith.constant 0 : index
    %5 = vector.load %arg5[%c4, %c0_8] : memref<36x81xbf16, #tpu.memory_space<vmem>>, vector<4x81xbf16>
    tpu.vector_store %arg5[%c4, %c0_8], %4 {strides = array<i32>} : memref<36x81xbf16, #tpu.memory_space<vmem>>, vector<4x81xbf16>,
    %c0_9 = arith.constant 0 : index
    %c0_10 = arith.constant 0 : index
    %c0_11 = arith.constant 0 : index
    %c1_12 = arith.constant 1 : index
    %6 = vector.load %arg1[%c0_9, %c0_10, %c0_11, %c1_12] : memref<1x4x4x91xbf16, #tpu.memory_space<vmem>>, vector<1x1x4x81xbf16>
    %7 = vector.shape_cast %6 : vector<1x1x4x81xbf16> to vector<4x81xbf16>
    %c8 = arith.constant 8 : index
    %c0_13 = arith.constant 0 : index
    %8 = vector.load %arg5[%c8, %c0_13] : memref<36x81xbf16, #tpu.memory_space<vmem>>, vector<4x81xbf16>
    tpu.vector_store %arg5[%c8, %c0_13], %7 {strides = array<i32>} : memref<36x81xbf16, #tpu.memory_space<vmem>>, vector<4x81xbf16>,
    %c0_14 = arith.constant 0 : index
    %c2 = arith.constant 2 : index
    %c0_15 = arith.constant 0 : index
    %c0_16 = arith.constant 0 : index
    %9 = vector.load %arg1[%c0_14, %c2, %c0_15, %c0_16] : memref<1x4x4x91xbf16, #tpu.memory_space<vmem>>, vector<1x1x4x81xbf16>
    %10 = vector.shape_cast %9 : vector<1x1x4x81xbf16> to vector<4x81xbf16>
    %c12 = arith.constant 12 : index
    %c0_17 = arith.constant 0 : index
    %11 = vector.load %arg5[%c12, %c0_17] : memref<36x81xbf16, #tpu.memory_space<vmem>>, vector<4x81xbf16>
    tpu.vector_store %arg5[%c12, %c0_17], %10 {strides = array<i32>} : memref<36x81xbf16, #tpu.memory_space<vmem>>, vector<4x81xbf16>,
    %c0_18 = arith.constant 0 : index
    %c3 = arith.constant 3 : index
    %c0_19 = arith.constant 0 : index
    %c0_20 = arith.constant 0 : index
    %12 = vector.load %arg1[%c0_18, %c3, %c0_19, %c0_20] : memref<1x4x4x91xbf16, #tpu.memory_space<vmem>>, vector<1x1x4x81xbf16>
    %13 = vector.shape_cast %12 : vector<1x1x4x81xbf16> to vector<4x81xbf16>
    %c16 = arith.constant 16 : index
    %c0_21 = arith.constant 0 : index
    %14 = vector.load %arg5[%c16, %c0_21] : memref<36x81xbf16, #tpu.memory_space<vmem>>, vector<4x81xbf16>
    tpu.vector_store %arg5[%c16, %c0_21], %13 {strides = array<i32>} : memref<36x81xbf16, #tpu.memory_space<vmem>>, vector<4x81xbf16>,
    %c0_22 = arith.constant 0 : index
    %c2_23 = arith.constant 2 : index
    %c0_24 = arith.constant 0 : index
    %c1_25 = arith.constant 1 : index
    %15 = vector.load %arg1[%c0_22, %c2_23, %c0_24, %c1_25] : memref<1x4x4x91xbf16, #tpu.memory_space<vmem>>, vector<1x1x4x81xbf16>
    %16 = vector.shape_cast %15 : vector<1x1x4x81xbf16> to vector<4x81xbf16>
    %c20 = arith.constant 20 : index
    %c0_26 = arith.constant 0 : index
    %17 = vector.load %arg5[%c20, %c0_26] : memref<36x81xbf16, #tpu.memory_space<vmem>>, vector<4x81xbf16>
    tpu.vector_store %arg5[%c20, %c0_26], %16 {strides = array<i32>} : memref<36x81xbf16, #tpu.memory_space<vmem>>, vector<4x81xbf16>,
    %c0_27 = arith.constant 0 : index
    %c0_28 = arith.constant 0 : index
    %c0_29 = arith.constant 0 : index
    %c9 = arith.constant 9 : index
    %18 = vector.load %arg1[%c0_27, %c0_28, %c0_29, %c9] : memref<1x4x4x91xbf16, #tpu.memory_space<vmem>>, vector<1x1x4x81xbf16>
    %19 = vector.shape_cast %18 : vector<1x1x4x81xbf16> to vector<4x81xbf16>
    %c24 = arith.constant 24 : index
    %c0_30 = arith.constant 0 : index
    %20 = vector.load %arg5[%c24, %c0_30] : memref<36x81xbf16, #tpu.memory_space<vmem>>, vector<4x81xbf16>
    tpu.vector_store %arg5[%c24, %c0_30], %19 {strides = array<i32>} : memref<36x81xbf16, #tpu.memory_space<vmem>>, vector<4x81xbf16>,
    %c0_31 = arith.constant 0 : index
    %c1_32 = arith.constant 1 : index
    %c0_33 = arith.constant 0 : index
    %c9_34 = arith.constant 9 : index
    %21 = vector.load %arg1[%c0_31, %c1_32, %c0_33, %c9_34] : memref<1x4x4x91xbf16, #tpu.memory_space<vmem>>, vector<1x1x4x81xbf16>
    %22 = vector.shape_cast %21 : vector<1x1x4x81xbf16> to vector<4x81xbf16>
    %c28 = arith.constant 28 : index
    %c0_35 = arith.constant 0 : index
    %23 = vector.load %arg5[%c28, %c0_35] : memref<36x81xbf16, #tpu.memory_space<vmem>>, vector<4x81xbf16>
    tpu.vector_store %arg5[%c28, %c0_35], %22 {strides = array<i32>} : memref<36x81xbf16, #tpu.memory_space<vmem>>, vector<4x81xbf16>,
    %c0_36 = arith.constant 0 : index
    %c0_37 = arith.constant 0 : index
    %c0_38 = arith.constant 0 : index
    %c10 = arith.constant 10 : index
    %24 = vector.load %arg1[%c0_36, %c0_37, %c0_38, %c10] : memref<1x4x4x91xbf16, #tpu.memory_space<vmem>>, vector<1x1x4x81xbf16>
    %25 = vector.shape_cast %24 : vector<1x1x4x81xbf16> to vector<4x81xbf16>
    %c32 = arith.constant 32 : index
    %c0_39 = arith.constant 0 : index
    %26 = vector.load %arg5[%c32, %c0_39] : memref<36x81xbf16, #tpu.memory_space<vmem>>, vector<4x81xbf16>
    tpu.vector_store %arg5[%c32, %c0_39], %25 {strides = array<i32>} : memref<36x81xbf16, #tpu.memory_space<vmem>>, vector<4x81xbf16>,
    %c0_40 = arith.constant 0 : index
    %c0_41 = arith.constant 0 : index
    %27 = vector.load %arg2[%c0_40, %c0_41] : memref<8x36xbf16, #tpu.memory_space<vmem>>, vector<8x36xbf16>
    %c0_42 = arith.constant 0 : index
    %c0_43 = arith.constant 0 : index
    %28 = vector.load %arg5[%c0_42, %c0_43] : memref<36x81xbf16, #tpu.memory_space<vmem>>, vector<36x81xbf16>
    %cst = arith.constant dense<0.000000e+00> : vector<8x81xf32>
    %29 = tpu.matmul %27, %28, %cst {dimension_numbers = #tpu.dot_dimension_numbers<[1], [0], [0], [1], [0, 0, 1, 1], [], []>} : vector<8x36xbf16>, vector<36x81xbf16>, vector<8x81xf32> -> vector<8x81xf32>
    %c0_44 = arith.constant 0 : index
    %c0_45 = arith.constant 0 : index
    %30 = vector.load %arg3[%c0_44, %c0_45] : memref<8x1xf32, #tpu.memory_space<vmem>>, vector<8x1xf32>
    %31 = vector.broadcast %30 : vector<8x1xf32> to vector<8x81xf32>
    %32 = arith.addf %29, %31 : vector<8x81xf32>
    %cst_46 = arith.constant 5.000000e-01 : f32
    %33 = vector.broadcast %cst_46 : f32 to vector<8x81xf32>
    %34 = arith.mulf %33, %32 : vector<8x81xf32>
    %cst_47 = arith.constant 0.707106769 : f32
    %35 = vector.broadcast %cst_47 : f32 to vector<8x81xf32>
    %36 = arith.mulf %32, %35 : vector<8x81xf32>
    %37 = math.erf %36 : vector<8x81xf32>
    %cst_48 = arith.constant 1.000000e+00 : f32
    %38 = vector.broadcast %cst_48 : f32 to vector<8x81xf32>
    %39 = arith.addf %38, %37 : vector<8x81xf32>
    %40 = arith.mulf %34, %39 : vector<8x81xf32>
    %41 = arith.truncf %40 : vector<8x81xf32> to vector<8x81xbf16>
    %c0_49 = arith.constant 0 : index
    %c0_50 = arith.constant 0 : index
    %c0_51 = arith.constant 0 : index
    %42 = vector.load %arg4[%c0_49, %c0_50, %c0_51] : memref<1x8x81xbf16, #tpu.memory_space<vmem>>, vector<1x8x81xbf16>
    %43 = vector.shape_cast %42 : vector<1x8x81xbf16> to vector<8x81xbf16>
    %44 = vector.shape_cast %41 : vector<8x81xbf16> to vector<1x8x81xbf16>
    tpu.vector_store %arg4[%c0_49, %c0_50, %c0_51], %44 {strides = array<i32>} : memref<1x8x81xbf16, #tpu.memory_space<vmem>>, vector<1x8x81xbf16>,
    return
  }
  func.func @transform_0(%arg0: i32) -> (i32, i32, i32, i32) {
    %c0_i32 = arith.constant 0 : i32
    %c0_i32_0 = arith.constant 0 : i32
    %c0_i32_1 = arith.constant 0 : i32
    %c0_i32_2 = arith.constant 0 : i32
    return %arg0, %c0_i32, %c0_i32_0, %c0_i32_1 : i32, i32, i32, i32
  }
  func.func @transform_1(%arg0: i32) -> (i32, i32) {
    %c0_i32 = arith.constant 0 : i32
    %c0_i32_0 = arith.constant 0 : i32
    %c0_i32_1 = arith.constant 0 : i32
    return %c0_i32, %c0_i32_0 : i32, i32
  }
  func.func @transform_2(%arg0: i32) -> (i32, i32) {
    %c0_i32 = arith.constant 0 : i32
    %c0_i32_0 = arith.constant 0 : i32
    %c0_i32_1 = arith.constant 0 : i32
    return %c0_i32, %c0_i32_0 : i32, i32
  }
  func.func @transform_3(%arg0: i32) -> (i32, i32, i32) {
    %c0_i32 = arith.constant 0 : i32
    %c0_i32_0 = arith.constant 0 : i32
    %c0_i32_1 = arith.constant 0 : i32
    return %arg0, %c0_i32, %c0_i32_0 : i32, i32, i32
  }
}

module attributes {stable_mosaic.version = 11 : i64} {
  func.func @kernel(%arg0: i32, %arg1: memref<1x1x8x122xbf16, #tpu.memory_space<vmem>>, %arg2: memref<1x1x8x122xbf16, #tpu.memory_space<vmem>>, %arg3: memref<16x144xbf16, #tpu.memory_space<vmem>>, %arg4: memref<16x1xf32, #tpu.memory_space<vmem>>, %arg5: memref<1x16x100xf32, #tpu.memory_space<vmem>>, %arg6: memref<144x100xbf16, #tpu.memory_space<vmem>>) attributes {dimension_semantics = [#tpu.dimension_semantics<parallel>], iteration_bounds = array<i64: 2>, scalar_prefetch = 0 : i64, scratch_operands = 1 : i64, tpu.core_type = #tpu.core_type<tc>, window_params = [{transform_indices = @transform_0, window_bounds = array<i64: 1, 1, 8, 122>}, {transform_indices = @transform_1, window_bounds = array<i64: 1, 1, 8, 122>}, {pipeline_mode = #tpu.pipeline_mode<synchronous>, transform_indices = @transform_2, window_bounds = array<i64: 16, 144>}, {pipeline_mode = #tpu.pipeline_mode<synchronous>, transform_indices = @transform_3, window_bounds = array<i64: 16, 1>}, {transform_indices = @transform_4, window_bounds = array<i64: 1, 16, 100>}]} {
    %c0 = arith.constant 0 : index
    %c0_0 = arith.constant 0 : index
    %c0_1 = arith.constant 0 : index
    %c0_2 = arith.constant 0 : index
    %0 = vector.load %arg1[%c0, %c0_0, %c0_1, %c0_2] : memref<1x1x8x122xbf16, #tpu.memory_space<vmem>>, vector<1x1x8x100xbf16>
    %1 = vector.shape_cast %0 : vector<1x1x8x100xbf16> to vector<8x100xbf16>
    %c0_3 = arith.constant 0 : index
    %c0_4 = arith.constant 0 : index
    %2 = vector.load %arg6[%c0_3, %c0_4] : memref<144x100xbf16, #tpu.memory_space<vmem>>, vector<8x100xbf16>
    tpu.vector_store %arg6[%c0_3, %c0_4], %1 {strides = array<i32>} : memref<144x100xbf16, #tpu.memory_space<vmem>>, vector<8x100xbf16>,
    %c0_5 = arith.constant 0 : index
    %c0_6 = arith.constant 0 : index
    %c0_7 = arith.constant 0 : index
    %c1 = arith.constant 1 : index
    %3 = vector.load %arg1[%c0_5, %c0_6, %c0_7, %c1] : memref<1x1x8x122xbf16, #tpu.memory_space<vmem>>, vector<1x1x8x100xbf16>
    %4 = vector.shape_cast %3 : vector<1x1x8x100xbf16> to vector<8x100xbf16>
    %c8 = arith.constant 8 : index
    %c0_8 = arith.constant 0 : index
    %5 = vector.load %arg6[%c8, %c0_8] : memref<144x100xbf16, #tpu.memory_space<vmem>>, vector<8x100xbf16>
    tpu.vector_store %arg6[%c8, %c0_8], %4 {strides = array<i32>} : memref<144x100xbf16, #tpu.memory_space<vmem>>, vector<8x100xbf16>,
    %c0_9 = arith.constant 0 : index
    %c0_10 = arith.constant 0 : index
    %c0_11 = arith.constant 0 : index
    %c2 = arith.constant 2 : index
    %6 = vector.load %arg1[%c0_9, %c0_10, %c0_11, %c2] : memref<1x1x8x122xbf16, #tpu.memory_space<vmem>>, vector<1x1x8x100xbf16>
    %7 = vector.shape_cast %6 : vector<1x1x8x100xbf16> to vector<8x100xbf16>
    %c16 = arith.constant 16 : index
    %c0_12 = arith.constant 0 : index
    %8 = vector.load %arg6[%c16, %c0_12] : memref<144x100xbf16, #tpu.memory_space<vmem>>, vector<8x100xbf16>
    tpu.vector_store %arg6[%c16, %c0_12], %7 {strides = array<i32>} : memref<144x100xbf16, #tpu.memory_space<vmem>>, vector<8x100xbf16>,
    %c0_13 = arith.constant 0 : index
    %c0_14 = arith.constant 0 : index
    %c0_15 = arith.constant 0 : index
    %c10 = arith.constant 10 : index
    %9 = vector.load %arg1[%c0_13, %c0_14, %c0_15, %c10] : memref<1x1x8x122xbf16, #tpu.memory_space<vmem>>, vector<1x1x8x100xbf16>
    %10 = vector.shape_cast %9 : vector<1x1x8x100xbf16> to vector<8x100xbf16>
    %c24 = arith.constant 24 : index
    %c0_16 = arith.constant 0 : index
    %11 = vector.load %arg6[%c24, %c0_16] : memref<144x100xbf16, #tpu.memory_space<vmem>>, vector<8x100xbf16>
    tpu.vector_store %arg6[%c24, %c0_16], %10 {strides = array<i32>} : memref<144x100xbf16, #tpu.memory_space<vmem>>, vector<8x100xbf16>,
    %c0_17 = arith.constant 0 : index
    %c0_18 = arith.constant 0 : index
    %c0_19 = arith.constant 0 : index
    %c11 = arith.constant 11 : index
    %12 = vector.load %arg1[%c0_17, %c0_18, %c0_19, %c11] : memref<1x1x8x122xbf16, #tpu.memory_space<vmem>>, vector<1x1x8x100xbf16>
    %13 = vector.shape_cast %12 : vector<1x1x8x100xbf16> to vector<8x100xbf16>
    %c32 = arith.constant 32 : index
    %c0_20 = arith.constant 0 : index
    %14 = vector.load %arg6[%c32, %c0_20] : memref<144x100xbf16, #tpu.memory_space<vmem>>, vector<8x100xbf16>
    tpu.vector_store %arg6[%c32, %c0_20], %13 {strides = array<i32>} : memref<144x100xbf16, #tpu.memory_space<vmem>>, vector<8x100xbf16>,
    %c0_21 = arith.constant 0 : index
    %c0_22 = arith.constant 0 : index
    %c0_23 = arith.constant 0 : index
    %c12 = arith.constant 12 : index
    %15 = vector.load %arg1[%c0_21, %c0_22, %c0_23, %c12] : memref<1x1x8x122xbf16, #tpu.memory_space<vmem>>, vector<1x1x8x100xbf16>
    %16 = vector.shape_cast %15 : vector<1x1x8x100xbf16> to vector<8x100xbf16>
    %c40 = arith.constant 40 : index
    %c0_24 = arith.constant 0 : index
    %17 = vector.load %arg6[%c40, %c0_24] : memref<144x100xbf16, #tpu.memory_space<vmem>>, vector<8x100xbf16>
    tpu.vector_store %arg6[%c40, %c0_24], %16 {strides = array<i32>} : memref<144x100xbf16, #tpu.memory_space<vmem>>, vector<8x100xbf16>,
    %c0_25 = arith.constant 0 : index
    %c0_26 = arith.constant 0 : index
    %c0_27 = arith.constant 0 : index
    %c20 = arith.constant 20 : index
    %18 = vector.load %arg1[%c0_25, %c0_26, %c0_27, %c20] : memref<1x1x8x122xbf16, #tpu.memory_space<vmem>>, vector<1x1x8x100xbf16>
    %19 = vector.shape_cast %18 : vector<1x1x8x100xbf16> to vector<8x100xbf16>
    %c48 = arith.constant 48 : index
    %c0_28 = arith.constant 0 : index
    %20 = vector.load %arg6[%c48, %c0_28] : memref<144x100xbf16, #tpu.memory_space<vmem>>, vector<8x100xbf16>
    tpu.vector_store %arg6[%c48, %c0_28], %19 {strides = array<i32>} : memref<144x100xbf16, #tpu.memory_space<vmem>>, vector<8x100xbf16>,
    %c0_29 = arith.constant 0 : index
    %c0_30 = arith.constant 0 : index
    %c0_31 = arith.constant 0 : index
    %c21 = arith.constant 21 : index
    %21 = vector.load %arg1[%c0_29, %c0_30, %c0_31, %c21] : memref<1x1x8x122xbf16, #tpu.memory_space<vmem>>, vector<1x1x8x100xbf16>
    %22 = vector.shape_cast %21 : vector<1x1x8x100xbf16> to vector<8x100xbf16>
    %c56 = arith.constant 56 : index
    %c0_32 = arith.constant 0 : index
    %23 = vector.load %arg6[%c56, %c0_32] : memref<144x100xbf16, #tpu.memory_space<vmem>>, vector<8x100xbf16>
    tpu.vector_store %arg6[%c56, %c0_32], %22 {strides = array<i32>} : memref<144x100xbf16, #tpu.memory_space<vmem>>, vector<8x100xbf16>,
    %c0_33 = arith.constant 0 : index
    %c0_34 = arith.constant 0 : index
    %c0_35 = arith.constant 0 : index
    %c22 = arith.constant 22 : index
    %24 = vector.load %arg1[%c0_33, %c0_34, %c0_35, %c22] : memref<1x1x8x122xbf16, #tpu.memory_space<vmem>>, vector<1x1x8x100xbf16>
    %25 = vector.shape_cast %24 : vector<1x1x8x100xbf16> to vector<8x100xbf16>
    %c64 = arith.constant 64 : index
    %c0_36 = arith.constant 0 : index
    %26 = vector.load %arg6[%c64, %c0_36] : memref<144x100xbf16, #tpu.memory_space<vmem>>, vector<8x100xbf16>
    tpu.vector_store %arg6[%c64, %c0_36], %25 {strides = array<i32>} : memref<144x100xbf16, #tpu.memory_space<vmem>>, vector<8x100xbf16>,
    %c0_37 = arith.constant 0 : index
    %c0_38 = arith.constant 0 : index
    %c0_39 = arith.constant 0 : index
    %c0_40 = arith.constant 0 : index
    %27 = vector.load %arg2[%c0_37, %c0_38, %c0_39, %c0_40] : memref<1x1x8x122xbf16, #tpu.memory_space<vmem>>, vector<1x1x8x100xbf16>
    %28 = vector.shape_cast %27 : vector<1x1x8x100xbf16> to vector<8x100xbf16>
    %c72 = arith.constant 72 : index
    %c0_41 = arith.constant 0 : index
    %29 = vector.load %arg6[%c72, %c0_41] : memref<144x100xbf16, #tpu.memory_space<vmem>>, vector<8x100xbf16>
    tpu.vector_store %arg6[%c72, %c0_41], %28 {strides = array<i32>} : memref<144x100xbf16, #tpu.memory_space<vmem>>, vector<8x100xbf16>,
    %c0_42 = arith.constant 0 : index
    %c0_43 = arith.constant 0 : index
    %c0_44 = arith.constant 0 : index
    %c1_45 = arith.constant 1 : index
    %30 = vector.load %arg2[%c0_42, %c0_43, %c0_44, %c1_45] : memref<1x1x8x122xbf16, #tpu.memory_space<vmem>>, vector<1x1x8x100xbf16>
    %31 = vector.shape_cast %30 : vector<1x1x8x100xbf16> to vector<8x100xbf16>
    %c80 = arith.constant 80 : index
    %c0_46 = arith.constant 0 : index
    %32 = vector.load %arg6[%c80, %c0_46] : memref<144x100xbf16, #tpu.memory_space<vmem>>, vector<8x100xbf16>
    tpu.vector_store %arg6[%c80, %c0_46], %31 {strides = array<i32>} : memref<144x100xbf16, #tpu.memory_space<vmem>>, vector<8x100xbf16>,
    %c0_47 = arith.constant 0 : index
    %c0_48 = arith.constant 0 : index
    %c0_49 = arith.constant 0 : index
    %c2_50 = arith.constant 2 : index
    %33 = vector.load %arg2[%c0_47, %c0_48, %c0_49, %c2_50] : memref<1x1x8x122xbf16, #tpu.memory_space<vmem>>, vector<1x1x8x100xbf16>
    %34 = vector.shape_cast %33 : vector<1x1x8x100xbf16> to vector<8x100xbf16>
    %c88 = arith.constant 88 : index
    %c0_51 = arith.constant 0 : index
    %35 = vector.load %arg6[%c88, %c0_51] : memref<144x100xbf16, #tpu.memory_space<vmem>>, vector<8x100xbf16>
    tpu.vector_store %arg6[%c88, %c0_51], %34 {strides = array<i32>} : memref<144x100xbf16, #tpu.memory_space<vmem>>, vector<8x100xbf16>,
    %c0_52 = arith.constant 0 : index
    %c0_53 = arith.constant 0 : index
    %c0_54 = arith.constant 0 : index
    %c10_55 = arith.constant 10 : index
    %36 = vector.load %arg2[%c0_52, %c0_53, %c0_54, %c10_55] : memref<1x1x8x122xbf16, #tpu.memory_space<vmem>>, vector<1x1x8x100xbf16>
    %37 = vector.shape_cast %36 : vector<1x1x8x100xbf16> to vector<8x100xbf16>
    %c96 = arith.constant 96 : index
    %c0_56 = arith.constant 0 : index
    %38 = vector.load %arg6[%c96, %c0_56] : memref<144x100xbf16, #tpu.memory_space<vmem>>, vector<8x100xbf16>
    tpu.vector_store %arg6[%c96, %c0_56], %37 {strides = array<i32>} : memref<144x100xbf16, #tpu.memory_space<vmem>>, vector<8x100xbf16>,
    %c0_57 = arith.constant 0 : index
    %c0_58 = arith.constant 0 : index
    %c0_59 = arith.constant 0 : index
    %c11_60 = arith.constant 11 : index
    %39 = vector.load %arg2[%c0_57, %c0_58, %c0_59, %c11_60] : memref<1x1x8x122xbf16, #tpu.memory_space<vmem>>, vector<1x1x8x100xbf16>
    %40 = vector.shape_cast %39 : vector<1x1x8x100xbf16> to vector<8x100xbf16>
    %c104 = arith.constant 104 : index
    %c0_61 = arith.constant 0 : index
    %41 = vector.load %arg6[%c104, %c0_61] : memref<144x100xbf16, #tpu.memory_space<vmem>>, vector<8x100xbf16>
    tpu.vector_store %arg6[%c104, %c0_61], %40 {strides = array<i32>} : memref<144x100xbf16, #tpu.memory_space<vmem>>, vector<8x100xbf16>,
    %c0_62 = arith.constant 0 : index
    %c0_63 = arith.constant 0 : index
    %c0_64 = arith.constant 0 : index
    %c12_65 = arith.constant 12 : index
    %42 = vector.load %arg2[%c0_62, %c0_63, %c0_64, %c12_65] : memref<1x1x8x122xbf16, #tpu.memory_space<vmem>>, vector<1x1x8x100xbf16>
    %43 = vector.shape_cast %42 : vector<1x1x8x100xbf16> to vector<8x100xbf16>
    %c112 = arith.constant 112 : index
    %c0_66 = arith.constant 0 : index
    %44 = vector.load %arg6[%c112, %c0_66] : memref<144x100xbf16, #tpu.memory_space<vmem>>, vector<8x100xbf16>
    tpu.vector_store %arg6[%c112, %c0_66], %43 {strides = array<i32>} : memref<144x100xbf16, #tpu.memory_space<vmem>>, vector<8x100xbf16>,
    %c0_67 = arith.constant 0 : index
    %c0_68 = arith.constant 0 : index
    %c0_69 = arith.constant 0 : index
    %c20_70 = arith.constant 20 : index
    %45 = vector.load %arg2[%c0_67, %c0_68, %c0_69, %c20_70] : memref<1x1x8x122xbf16, #tpu.memory_space<vmem>>, vector<1x1x8x100xbf16>
    %46 = vector.shape_cast %45 : vector<1x1x8x100xbf16> to vector<8x100xbf16>
    %c120 = arith.constant 120 : index
    %c0_71 = arith.constant 0 : index
    %47 = vector.load %arg6[%c120, %c0_71] : memref<144x100xbf16, #tpu.memory_space<vmem>>, vector<8x100xbf16>
    tpu.vector_store %arg6[%c120, %c0_71], %46 {strides = array<i32>} : memref<144x100xbf16, #tpu.memory_space<vmem>>, vector<8x100xbf16>,
    %c0_72 = arith.constant 0 : index
    %c0_73 = arith.constant 0 : index
    %c0_74 = arith.constant 0 : index
    %c21_75 = arith.constant 21 : index
    %48 = vector.load %arg2[%c0_72, %c0_73, %c0_74, %c21_75] : memref<1x1x8x122xbf16, #tpu.memory_space<vmem>>, vector<1x1x8x100xbf16>
    %49 = vector.shape_cast %48 : vector<1x1x8x100xbf16> to vector<8x100xbf16>
    %c128 = arith.constant 128 : index
    %c0_76 = arith.constant 0 : index
    %50 = vector.load %arg6[%c128, %c0_76] : memref<144x100xbf16, #tpu.memory_space<vmem>>, vector<8x100xbf16>
    tpu.vector_store %arg6[%c128, %c0_76], %49 {strides = array<i32>} : memref<144x100xbf16, #tpu.memory_space<vmem>>, vector<8x100xbf16>,
    %c0_77 = arith.constant 0 : index
    %c0_78 = arith.constant 0 : index
    %c0_79 = arith.constant 0 : index
    %c22_80 = arith.constant 22 : index
    %51 = vector.load %arg2[%c0_77, %c0_78, %c0_79, %c22_80] : memref<1x1x8x122xbf16, #tpu.memory_space<vmem>>, vector<1x1x8x100xbf16>
    %52 = vector.shape_cast %51 : vector<1x1x8x100xbf16> to vector<8x100xbf16>
    %c136 = arith.constant 136 : index
    %c0_81 = arith.constant 0 : index
    %53 = vector.load %arg6[%c136, %c0_81] : memref<144x100xbf16, #tpu.memory_space<vmem>>, vector<8x100xbf16>
    tpu.vector_store %arg6[%c136, %c0_81], %52 {strides = array<i32>} : memref<144x100xbf16, #tpu.memory_space<vmem>>, vector<8x100xbf16>,
    %c0_82 = arith.constant 0 : index
    %c0_83 = arith.constant 0 : index
    %54 = vector.load %arg3[%c0_82, %c0_83] : memref<16x144xbf16, #tpu.memory_space<vmem>>, vector<16x144xbf16>
    %c0_84 = arith.constant 0 : index
    %c0_85 = arith.constant 0 : index
    %55 = vector.load %arg6[%c0_84, %c0_85] : memref<144x100xbf16, #tpu.memory_space<vmem>>, vector<144x100xbf16>
    %cst = arith.constant dense<0.000000e+00> : vector<16x100xf32>
    %56 = tpu.matmul %54, %55, %cst {dimension_numbers = #tpu.dot_dimension_numbers<[1], [0], [0], [1], [0, 0, 1, 1], [], []>} : vector<16x144xbf16>, vector<144x100xbf16>, vector<16x100xf32> -> vector<16x100xf32>
    %c0_86 = arith.constant 0 : index
    %c0_87 = arith.constant 0 : index
    %57 = vector.load %arg4[%c0_86, %c0_87] : memref<16x1xf32, #tpu.memory_space<vmem>>, vector<16x1xf32>
    %58 = vector.broadcast %57 : vector<16x1xf32> to vector<16x100xf32>
    %59 = arith.addf %56, %58 : vector<16x100xf32>
    %cst_88 = arith.constant 5.000000e-01 : f32
    %60 = vector.broadcast %cst_88 : f32 to vector<16x100xf32>
    %61 = arith.mulf %60, %59 : vector<16x100xf32>
    %cst_89 = arith.constant 0.707106769 : f32
    %62 = vector.broadcast %cst_89 : f32 to vector<16x100xf32>
    %63 = arith.mulf %59, %62 : vector<16x100xf32>
    %64 = math.erf %63 : vector<16x100xf32>
    %cst_90 = arith.constant 1.000000e+00 : f32
    %65 = vector.broadcast %cst_90 : f32 to vector<16x100xf32>
    %66 = arith.addf %65, %64 : vector<16x100xf32>
    %67 = arith.mulf %61, %66 : vector<16x100xf32>
    %c0_91 = arith.constant 0 : index
    %c0_92 = arith.constant 0 : index
    %c0_93 = arith.constant 0 : index
    %68 = vector.load %arg5[%c0_91, %c0_92, %c0_93] : memref<1x16x100xf32, #tpu.memory_space<vmem>>, vector<1x16x100xf32>
    %69 = vector.shape_cast %68 : vector<1x16x100xf32> to vector<16x100xf32>
    %70 = vector.shape_cast %67 : vector<16x100xf32> to vector<1x16x100xf32>
    tpu.vector_store %arg5[%c0_91, %c0_92, %c0_93], %70 {strides = array<i32>} : memref<1x16x100xf32, #tpu.memory_space<vmem>>, vector<1x16x100xf32>,
    return
  }
  func.func @transform_0(%arg0: i32) -> (i32, i32, i32, i32) {
    %c0_i32 = arith.constant 0 : i32
    %c0_i32_0 = arith.constant 0 : i32
    %c0_i32_1 = arith.constant 0 : i32
    %c0_i32_2 = arith.constant 0 : i32
    return %arg0, %c0_i32, %c0_i32_0, %c0_i32_1 : i32, i32, i32, i32
  }
  func.func @transform_1(%arg0: i32) -> (i32, i32, i32, i32) {
    %c0_i32 = arith.constant 0 : i32
    %c0_i32_0 = arith.constant 0 : i32
    %c0_i32_1 = arith.constant 0 : i32
    %c0_i32_2 = arith.constant 0 : i32
    return %arg0, %c0_i32, %c0_i32_0, %c0_i32_1 : i32, i32, i32, i32
  }
  func.func @transform_2(%arg0: i32) -> (i32, i32) {
    %c0_i32 = arith.constant 0 : i32
    %c0_i32_0 = arith.constant 0 : i32
    %c0_i32_1 = arith.constant 0 : i32
    return %c0_i32, %c0_i32_0 : i32, i32
  }
  func.func @transform_3(%arg0: i32) -> (i32, i32) {
    %c0_i32 = arith.constant 0 : i32
    %c0_i32_0 = arith.constant 0 : i32
    %c0_i32_1 = arith.constant 0 : i32
    return %c0_i32, %c0_i32_0 : i32, i32
  }
  func.func @transform_4(%arg0: i32) -> (i32, i32, i32) {
    %c0_i32 = arith.constant 0 : i32
    %c0_i32_0 = arith.constant 0 : i32
    %c0_i32_1 = arith.constant 0 : i32
    return %arg0, %c0_i32, %c0_i32_0 : i32, i32, i32
  }
}

</mosaic_0001>

<bundles_post_ra>
// kernel: conv2x_forward.2
= control target key start
LH: loop header
LB: loop body
LE: loop exit
PB: predicated region body
PF: predicated region fallthrough
CT: control target
= control target key end

     0   :  { %s504_s12 = smov 0   ;;  %s540_s0 = inlined_call_operand.vmem [shape: bf16[2,4,4,91], index: 0, kind: input, shape index: {}]   ;;  %s541_s1 = inlined_call_operand.vmem [shape: bf16[8,36], index: 1, kind: input, shape index: {}]   ;;  %s542_s2 = inlined_call_operand.vmem [shape: f32[8,1], index: 2, kind: input, shape index: {}]   ;;  %s543_s3 = inlined_call_operand.vmem [shape: bf16[2,8,81], index: 3, kind: output, shape index: {}]  }
   0x1 LB: > { %s406_s13 = sadd.s32 4294967295, %s475_s12   ;;  %p410_p0 = scmp.ge.s32.totalorder %s475_s12, 1  ;;  %s475_s12 = sphi %s504_s12, %s13_s12  }
   0x2   : > { %p137_p1 = scmp.lt.s32.totalorder %s475_s12, 3 }
   0x4   : > { %p138_p2 = pnand %p410_p0, %p137_p1 }
   0x5   : > { %p160_p3 = scmp.lt.s32.totalorder (!%p138_p2), %s406_s13, 1  ;;  %v180_v0 = vlaneseq (!%p138_p2)  ;;  %v477_v1 = vmov (!%p138_p2), 1983009808   ;;  %v478_v5 = vmov (!%p138_p2), 0.0   ;;  %vm171_vm0 = vcmask (!%p138_p2), 656384   ;;  %s479_s18 = smov (!%p138_p2), 119  }
   0x6   : > { %141 = sbr.rel (%p138_p2) target bundleno = 386 (0x182), region = 32  ;;  %v178_v2 = vunpack.c.l.s4 (!%p138_p2), %v477_v1  ;;  %433 = vmatprep.subr.bf16.mxu0 (!%p138_p2), %v478_v5  ;;  %s480_s19 = smov (!%p138_p2), 127   ;;  %vm185_vm1 = vcmask (!%p138_p2), 658434   ;;  %vm481_vm2 = vmmov (!%p138_p2), 0   ;;  %v276_v18 = vld [vmem:[%s542_s2] sm:$0xff] (!%p138_p2)  ;;  %v483_v19 = vmov (!%p138_p2), 0  }
   0x7   : > { %v181_v3 = vshrl.u32 (!%p138_p2), %v180_v0, 7  ;;  %439 = vmatprep.mubr.msk.bf16.mxu0 (!%p138_p2), %vm481_vm2, %v478_v5  ;;  %s482_s20 = smov (!%p138_p2), 118   ;;  %458 = vset.pattern.permute.xlu1 (!%p138_p2), %v483_v19  ;;  %vm301_vm3 = vcmask (!%p138_p2), 1041408   ;;  %v270_v29 = vld [vmem:[%s541_s1] sm:$0xf] (!%p138_p2)  ;;  %vm297_vm4 = vcmask (!%p138_p2), 293888  }
   0x8   : > { %v179_v4 = vunpack.c.0.s8 (!%p138_p2), %v178_v2  ;;  %459 = vset.pattern.permute.xlu0 (!%p138_p2), %v483_v19  ;;  %vm351_vm5 = vcmask (!%p138_p2), 658432  }
   0xa   : > { %v182_v6 = vsub.s32 (!%p138_p2), %v179_v4, %v181_v3 }
   0xd   : > { %s545_s13 = smov (!%p160_p3, %s406_s13), 1 }
   0xe   : > { %s428_s14 = sshll.u32 %s545_s13, 3  ;;  %s413_s25 = sshll.u32 %s545_s13, 2 }
   0xf   : > { %s164_s17 = scalar_lea.vmem %s540_s0, %s428_s14  ;;  %s168_s28 = scalar_lea.vmem %s543_s3, %s413_s25 }
  0x10   : > { %v419_v7 = vld.sshfl [vmem:[%s164_s17] sm:$0x3 pattern:$0x76325410]  ;;  %v417_v12 = vld [vmem:[%s164_s17 + $0x6] sm:$0x3] }
  0x11   : > { %239 = vrot.lane.b32.xlu1 %v419_v7, %s479_s18  ;;  %196 = vrot.lane.b32.xlu0 %v419_v7, %s480_s19  ;;  %v460_v8 = vld [vmem:[%s164_s17 + $0x2] ss:$0 sps:$4 sm:$0x33]   ;;  %v461_v9 = vld [vmem:[%s164_s17 + $0x4] ss:$0 sps:$4 sm:$0x33]  }
  0x12   : > { %v170_v10 = vld [vmem:[%s164_s17] sm:$0x3]  ;;  %v252_v11 = vrot.slane %v460_v8, %v182_v6  ;;  %v225_v13 = vrot.slane %v461_v9, %v182_v6  ;;  %215 = vst.msk [vmem:[#allocation2 + $0x8] sm:$0x3] %vm171_vm0, %v417_v12 }
  0x13   : > { %172 = vst.msk [vmem:[#allocation2] sm:$0x3] %vm171_vm0, %v170_v10  ;;  %v462_v14 = vld [vmem:[%s164_s17 + $0x2] ss:$0 sps:$4 sm:$0x33]  }
  0x14   : > { %v463_v15 = vld [vmem:[%s164_s17 + $0x4] ss:$0 sps:$4 sm:$0x33]   ;;  %v183_v16 = vrot.slane %v462_v14, %v182_v6 }
  0x15   : > { %253 = vrot.lane.b32.xlu1 %v252_v11, %s479_s18  ;;  %226 = vrot.lane.b32.xlu0 %v225_v13, %s480_s19  ;;  %v210_v17 = vrot.slane %v463_v15, %v182_v6 }
  0x16   : > { %186 = vst.msk [vmem:[#allocation2] sm:$0xc] %vm185_vm1, %v183_v16 }
  0x17   : > { %212 = vst.msk [vmem:[#allocation2 + $0x4] sm:$0xc] %vm185_vm1, %v210_v17 }
  0x19   : > { %266 = vrot.lane.b32.xlu0 %v419_v7, %s482_s20  ;;  %279 = vperm.xlu1 %458, %v276_v18  }
  0x83   : > { %v240_v20 = vpop.permute.xlu1 %239  ;;  %v197_v21 = vpop.permute.xlu0 %196 }
  0x84   : > { %242 = vst.msk [vmem:[#allocation2 + $0xc] sm:$0x3] %vm171_vm0, %v240_v20  ;;  %199 = vst.msk [vmem:[#allocation2 + $0x4] sm:$0x3] %vm171_vm0, %v197_v21 }
  0x87   : > { %v254_v22 = vpop.permute.xlu1 %253  ;;  %v227_v23 = vpop.permute.xlu0 %226 }
  0x88   : > { %256 = vst.msk [vmem:[#allocation2 + $0xc] sm:$0xc] %vm185_vm1, %v254_v22  ;;  %229 = vst.msk [vmem:[#allocation2 + $0x8] sm:$0xc] %vm185_vm1, %v227_v23 }
  0x8b   : > { %v464_v24 = vld [vmem:[#allocation2] sm:$0xff]   ;;  %v267_v25 = vpop.permute.xlu0 %266 }
  0x8c   : > { %269 = vst.msk [vmem:[#allocation2 + $0x10] sm:$0x3] %vm171_vm0, %v267_v25  ;;  %434 = vmatpush3.bf16.msra.mxu0 %v464_v24 }
  0x8d   : > { %435 = vmatprep.subr.bf16.mxu0 %v478_v5 }
  0x8f   : > { %v465_v26 = vld [vmem:[#allocation2 + $0x8] sm:$0xff]  }
  0x90   : > { %436 = vmatpush3.bf16.msra.mxu0 %v465_v26 }
  0x91   : > { %437 = vmatprep.subr.bf16.mxu0 %v478_v5 }
  0x93   : > { %v466_v27 = vld [vmem:[#allocation2 + $0x10] ss:$0 sps:$4 sm:$0x33]  }
  0x94   : > { %v303_v28 = vsel %vm301_vm3, %v466_v27, 0 }
  0x95   : > { %438 = vmatpush3.bf16.msra.mxu0 %v303_v28 }
  0x98   : > { %440 = vmatmul.mubr.msk.bf16.vlgmr.msra.gmra.mrb[0].mxu0 %vm297_vm4, %v270_v29  ;;  %v280_v30 = vpop.permute.xlu1 %279 }
 0x16b   : > { %v339_v31 = vpop.f32.mrb[0].mxu0 }
 0x16c   : > { %v340_v32 = vadd.f32 %v339_v31, %v280_v30  ;;  %v441_v33 = vpop.f32.mrb[1].mxu0 }
 0x16d   : > { %v342_v34 = vpop.f32.mrb[2].mxu0 }
 0x16e   : > { %v346_v35 = vmul.f32 0.70710677, %v340_v32  ;;  %v442_v36 = vpop.f32.mrb[3].mxu0  ;;  %v345_v38 = vmul.f32 0.5, %v340_v32 }
 0x170   : > { %467 = verf.f32 %v346_v35 }
 0x17a   : > { %v468_v37 = vpop.eup %467 }
 0x17b   : > { %v348_v39 = vadd.f32 1.0, %v468_v37 }
 0x17d   : > { %v349_v40 = vmul.f32 %v348_v39, %v345_v38 }
 0x17f   : > { %v350_v41 = vpack.c.bf16 %v349_v40, %v349_v40 }
 0x181   : > { %352 = vst.msk [vmem:[%s168_s28] sm:$0xf] %vm351_vm5, %v350_v41 }
 0x182 PF: > { %s13_s12 = sadd.s32 1, %s475_s12  }
 0x183   : > { %p10_p4 = scmp.ge.s32.totalorder %s13_s12, 4  }
 0x185   :  { %12 = sbr.rel (!%p10_p4) target bundleno = 1 (0x1), region = 65 }

// kernel: conv2x_forward.3
= control target key start
LH: loop header
LB: loop body
LE: loop exit
PB: predicated region body
PF: predicated region fallthrough
CT: control target
= control target key end

     0   :  { %s625_s15 = smov 0   ;;  %s705_s0 = inlined_call_operand.vmem [shape: bf16[2,1,8,122], index: 0, kind: input, shape index: {}]   ;;  %s706_s1 = inlined_call_operand.vmem [shape: bf16[2,1,8,122], index: 1, kind: input, shape index: {}]   ;;  %s707_s2 = inlined_call_operand.vmem [shape: bf16[16,144], index: 2, kind: input, shape index: {}]   ;;  %s708_s3 = inlined_call_operand.vmem [shape: f32[16,1], index: 3, kind: input, shape index: {}]   ;;  %s709_s4 = inlined_call_operand.vmem [shape: f32[2,16,100], index: 4, kind: output, shape index: {}]  }
   0x1 LB: > { %s508_s16 = sadd.s32 4294967295, %s589_s15   ;;  %p512_p0 = scmp.ge.s32.totalorder %s589_s15, 1  ;;  %s589_s15 = sphi %s625_s15, %s14_s15  }
   0x2   : > { %p170_p1 = scmp.lt.s32.totalorder %s589_s15, 3 }
   0x4   : > { %p171_p2 = pnand %p512_p0, %p170_p1 }
   0x5   : > { %p199_p3 = scmp.lt.s32.totalorder (!%p171_p2), %s508_s16, 1  ;;  %v591_v0 = vmov (!%p171_p2), 0   ;;  %s592_s21 = smov (!%p171_p2), 127   ;;  %vm214_vm0 = vcmask (!%p171_p2), 814080   ;;  %vm223_vm1 = vcmask (!%p171_p2), 818180   ;;  %vm383_vm2 = vcmask (!%p171_p2), 130048  }
   0x6   : > { %174 = sbr.rel (%p171_p2) target bundleno = 409 (0x199), region = 36  ;;  %387 = vmatprep.subr.bf16.mxu0 (!%p171_p2), %v591_v0  ;;  %557 = vset.pattern.permute.xlu0 (!%p171_p2), %v591_v0  ;;  %s593_s22 = smov (!%p171_p2), 118   ;;  %v578_v19 = vld [vmem:[%s707_s2 + $0x4] ss:$8 sps:$4 sm:$0xff] (!%p171_p2)   ;;  %v576_v47 = vld [vmem:[%s707_s2] ss:$8 sps:$4 sm:$0xff] (!%p171_p2)  }
   0x7   : > { %558 = vset.pattern.permute.xlu1 (!%p171_p2), %v591_v0  ;;  %s594_s26 = smov (!%p171_p2), 126   ;;  %s595_s27 = smov (!%p171_p2), 117   ;;  %536 = vmatprep.mubr.msk.bf16.mxu0 (!%p171_p2), %vm383_vm2, %v578_v19  ;;  %v362_v20 = vld [vmem:[%s708_s3] sm:$0xff] (!%p171_p2)  ;;  %v363_v21 = vld [vmem:[%s708_s3 + $0x8] sm:$0xff] (!%p171_p2)  ;;  %vm438_vm3 = vcmask (!%p171_p2), 818176  }
   0x8   : > { %s596_s28 = smov (!%p171_p2), 116   ;;  %s597_s29 = smov (!%p171_p2), 108  }
   0x9   : > { %s598_s30 = smov (!%p171_p2), 107   ;;  %s599_s5 = smov (!%p171_p2), 106  }
   0xd   : > { %s711_s16 = smov (!%p199_p3, %s508_s16), 1 }
   0xe   : > { %s513_s17 = sshll.u32 %s711_s16, 2  ;;  %s539_s14 = sshll.u32 %s711_s16, 4 }
   0xf   : > { %s202_s20 = scalar_lea.vmem %s705_s0, %s513_s17  ;;  %s647_s25 = scalar_lea.vmem %s706_s1, %s513_s17 }
  0x10   : > { %v559_v1 = vld [vmem:[%s202_s20] ss:$0 sps:$4 sm:$0xff]   ;;  %s211_s19 = scalar_lea.vmem %s709_s4, %s539_s14 }
  0x11   : > { %v560_v2 = vld [vmem:[%s202_s20] ss:$0 sps:$4 sm:$0xff]   ;;  %220 = vrot.lane.b32.xlu0 %v559_v1, %s592_s21 }
  0x12   : > { %v561_v3 = vld [vmem:[%s202_s20] ss:$0 sps:$4 sm:$0xff]   ;;  %237 = vrot.lane.b32.xlu1 %v560_v2, %s593_s22 }
  0x13   : > { %v562_v4 = vld [vmem:[%s202_s20] ss:$0 sps:$4 sm:$0xff]  }
  0x14   : > { %v563_v5 = vld [vmem:[%s202_s20] ss:$0 sps:$4 sm:$0xff]  }
  0x15   : > { %229 = vrot.lane.b32.xlu0 %v561_v3, %s594_s26  ;;  %v564_v6 = vld [vmem:[%s202_s20] ss:$0 sps:$4 sm:$0xff]  }
  0x16   : > { %245 = vrot.lane.b32.xlu1 %v562_v4, %s595_s27  ;;  %v565_v7 = vld [vmem:[%s202_s20] ss:$0 sps:$4 sm:$0xff]  }
  0x17   : > { %v566_v8 = vld [vmem:[%s202_s20] ss:$0 sps:$4 sm:$0xff]  }
  0x18   : > { %v213_v9 = vld [vmem:[%s202_s20] sm:$0xf] }
  0x19   : > { %253 = vrot.lane.b32.xlu0 %v563_v5, %s596_s28  ;;  %v575_v10 = vld [vmem:[%s647_s25] ss:$0 sps:$4 sm:$0xff]   ;;  %215 = vst.msk [vmem:[#allocation2] sm:$0xf] %vm214_vm0, %v213_v9 }
  0x1a   : > { %261 = vrot.lane.b32.xlu1 %v564_v6, %s597_s29  ;;  %286 = vst.msk [vmem:[#allocation2 + $0x20] sm:$0xf0] %vm223_vm1, %v575_v10  ;;  %v568_v11 = vld [vmem:[%s647_s25] ss:$0 sps:$4 sm:$0xff]  }
  0x1b   : > { %v567_v12 = vld [vmem:[%s647_s25] ss:$0 sps:$4 sm:$0xff]  }
  0x1c   : > { %v570_v13 = vld [vmem:[%s647_s25] ss:$0 sps:$4 sm:$0xff]  }
  0x1d   : > { %269 = vrot.lane.b32.xlu0 %v565_v7, %s598_s30  ;;  %v569_v14 = vld [vmem:[%s647_s25] ss:$0 sps:$4 sm:$0xff]  }
  0x1e   : > { %277 = vrot.lane.b32.xlu1 %v566_v8, %s599_s5  ;;  %v572_v15 = vld [vmem:[%s647_s25] ss:$0 sps:$4 sm:$0xff]  }
  0x1f   : > { %v571_v16 = vld [vmem:[%s647_s25] ss:$0 sps:$4 sm:$0xff]  }
  0x20   : > { %v574_v17 = vld [vmem:[%s647_s25] ss:$0 sps:$4 sm:$0xff]  }
  0x21   : > { %291 = vrot.lane.b32.xlu0 %v568_v11, %s592_s21  ;;  %v573_v18 = vld [vmem:[%s647_s25] ss:$0 sps:$4 sm:$0xff]  }
  0x22   : > { %299 = vrot.lane.b32.xlu1 %v567_v12, %s594_s26 }
  0x25   : > { %307 = vrot.lane.b32.xlu0 %v570_v13, %s593_s22 }
  0x26   : > { %315 = vrot.lane.b32.xlu1 %v569_v14, %s595_s27 }
  0x29   : > { %323 = vrot.lane.b32.xlu0 %v572_v15, %s596_s28 }
  0x2a   : > { %331 = vrot.lane.b32.xlu1 %v571_v16, %s597_s29 }
  0x2d   : > { %339 = vrot.lane.b32.xlu0 %v574_v17, %s598_s30 }
  0x2e   : > { %347 = vrot.lane.b32.xlu1 %v573_v18, %s599_s5 }
  0x31   : > { %366 = vperm.xlu0 %557, %v362_v20  }
  0x32   : > { %371 = vperm.xlu1 %558, %v363_v21  }
  0x83   : > { %v221_v22 = vpop.permute.xlu0 %220 }
  0x84   : > { %224 = vst.msk [vmem:[#allocation2] sm:$0xf0] %vm223_vm1, %v221_v22  ;;  %v238_v23 = vpop.permute.xlu1 %237 }
  0x85   : > { %240 = vst.msk [vmem:[#allocation2 + $0x8] sm:$0xf0] %vm223_vm1, %v238_v23 }
  0x87   : > { %v230_v24 = vpop.permute.xlu0 %229 }
  0x88   : > { %232 = vst.msk [vmem:[#allocation2 + $0x8] sm:$0xf] %vm214_vm0, %v230_v24  ;;  %v246_v25 = vpop.permute.xlu1 %245 }
  0x89   : > { %248 = vst.msk [vmem:[#allocation2 + $0x10] sm:$0xf] %vm214_vm0, %v246_v25 }
  0x8b   : > { %v254_v26 = vpop.permute.xlu0 %253  ;;  %v353_v27 = vld [vmem:[#allocation2] sm:$0xff] }
  0x8c   : > { %256 = vst.msk [vmem:[#allocation2 + $0x10] sm:$0xf0] %vm223_vm1, %v254_v26  ;;  %388 = vmatpush1.bf16.msra.mxu0 %v353_v27  ;;  %v262_v28 = vpop.permute.xlu1 %261 }
  0x8d   : > { %264 = vst.msk [vmem:[#allocation2 + $0x18] sm:$0xf] %vm214_vm0, %v262_v28  ;;  %389 = vmatprep.subr.bf16.mxu0 %v591_v0 }
  0x8f   : > { %v270_v29 = vpop.permute.xlu0 %269  ;;  %v354_v30 = vld [vmem:[#allocation2 + $0x8] sm:$0xff] }
  0x90   : > { %272 = vst.msk [vmem:[#allocation2 + $0x18] sm:$0xf0] %vm223_vm1, %v270_v29  ;;  %390 = vmatpush1.bf16.msra.mxu0 %v354_v30  ;;  %v278_v31 = vpop.permute.xlu1 %277 }
  0x91   : > { %280 = vst.msk [vmem:[#allocation2 + $0x20] sm:$0xf] %vm214_vm0, %v278_v31  ;;  %391 = vmatprep.subr.bf16.mxu0 %v591_v0 }
  0x93   : > { %v355_v32 = vld [vmem:[#allocation2 + $0x10] sm:$0xff]  ;;  %v292_v33 = vpop.permute.xlu0 %291 }
  0x94   : > { %392 = vmatpush1.bf16.msra.mxu0 %v355_v32  ;;  %v300_v34 = vpop.permute.xlu1 %299  ;;  %294 = vst.msk [vmem:[#allocation2 + $0x28] sm:$0xf] %vm214_vm0, %v292_v33 }
  0x95   : > { %302 = vst.msk [vmem:[#allocation2 + $0x28] sm:$0xf0] %vm223_vm1, %v300_v34  ;;  %393 = vmatprep.subr.bf16.mxu0 %v591_v0 }
  0x97   : > { %v356_v35 = vld [vmem:[#allocation2 + $0x18] sm:$0xff]  ;;  %v308_v36 = vpop.permute.xlu0 %307 }
  0x98   : > { %394 = vmatpush1.bf16.msra.mxu0 %v356_v35  ;;  %v316_v37 = vpop.permute.xlu1 %315  ;;  %310 = vst.msk [vmem:[#allocation2 + $0x30] sm:$0xf] %vm214_vm0, %v308_v36  ;;  %v357_v38 = vld [vmem:[#allocation2 + $0x20] sm:$0xff] }
  0x99   : > { %318 = vst.msk [vmem:[#allocation2 + $0x30] sm:$0xf0] %vm223_vm1, %v316_v37  ;;  %395 = vmatprep.subr.bf16.mxu0 %v591_v0 }
  0x9b   : > { %v324_v39 = vpop.permute.xlu0 %323 }
  0x9c   : > { %396 = vmatpush1.bf16.msra.mxu0 %v357_v38  ;;  %v332_v40 = vpop.permute.xlu1 %331  ;;  %326 = vst.msk [vmem:[#allocation2 + $0x38] sm:$0xf] %vm214_vm0, %v324_v39  ;;  %v358_v41 = vld [vmem:[#allocation2 + $0x28] sm:$0xff] }
  0x9d   : > { %334 = vst.msk [vmem:[#allocation2 + $0x38] sm:$0xf0] %vm223_vm1, %v332_v40  ;;  %397 = vmatprep.subr.bf16.mxu0 %v591_v0 }
  0x9f   : > { %v340_v42 = vpop.permute.xlu0 %339 }
  0xa0   : > { %398 = vmatpush1.bf16.msra.mxu0 %v358_v41  ;;  %v348_v43 = vpop.permute.xlu1 %347  ;;  %342 = vst.msk [vmem:[#allocation2 + $0x40] sm:$0xf] %vm214_vm0, %v340_v42  ;;  %v359_v44 = vld [vmem:[#allocation2 + $0x30] sm:$0xff] }
  0xa1   : > { %350 = vst.msk [vmem:[#allocation2 + $0x40] sm:$0xf0] %vm223_vm1, %v348_v43  ;;  %399 = vmatprep.subr.bf16.mxu0 %v591_v0 }
  0xa4   : > { %400 = vmatpush1.bf16.msra.mxu0 %v359_v44  ;;  %v360_v45 = vld [vmem:[#allocation2 + $0x38] sm:$0xff] }
  0xa5   : > { %401 = vmatprep.subr.bf16.mxu0 %v591_v0 }
  0xa8   : > { %402 = vmatpush1.bf16.msra.mxu0 %v360_v45  ;;  %v361_v46 = vld [vmem:[#allocation2 + $0x40] sm:$0xff] }
  0xa9   : > { %403 = vmatprep.subr.bf16.mxu0 %v591_v0 }
  0xac   : > { %404 = vmatpush1.bf16.msra.mxu0 %v361_v46 }
  0xaf   : > { %420 = vmatmul.mubr.bf16.vlgmr.msra.gmra.mrb[0].mxu0 %v576_v47 }
  0xb0   : > { %v367_v48 = vpop.permute.xlu0 %366 }
  0xb1   : > { %v372_v50 = vpop.permute.xlu1 %371 }
 0x182   : > { %v421_v49 = vpop.f32.mrb[0].mxu0 }
 0x183   : > { %v422_v51 = vadd.f32 %v421_v49, %v367_v48  ;;  %v423_v52 = vpop.f32.mrb[1].mxu0 }
 0x184   : > { %v424_v53 = vpop.f32.mrb[2].mxu0 }
 0x185   : > { %v430_v54 = vmul.f32 0.70710677, %v422_v51  ;;  %v425_v55 = vadd.f32 %v424_v53, %v372_v50  ;;  %v426_v56 = vpop.f32.mrb[3].mxu0  ;;  %v428_v59 = vmul.f32 0.5, %v422_v51 }
 0x187   : > { %579 = verf.f32 %v430_v54  ;;  %v431_v57 = vmul.f32 0.70710677, %v425_v55  ;;  %v429_v63 = vmul.f32 0.5, %v425_v55 }
 0x189   : > { %581 = verf.f32 %v431_v57 }
 0x191   : > { %v580_v58 = vpop.eup %579 }
 0x192   : > { %v434_v60 = vadd.f32 1.0, %v580_v58 }
 0x193   : > { %v582_v61 = vpop.eup %581 }
 0x194   : > { %v436_v62 = vmul.f32 %v434_v60, %v428_v59  ;;  %v435_v0 = vadd.f32 1.0, %v582_v61 }
 0x196   : > { %439 = vst.msk [vmem:[%s211_s19] sm:$0xff] %vm438_vm3, %v436_v62  ;;  %v437_v1 = vmul.f32 %v435_v0, %v429_v63 }
 0x198   : > { %440 = vst.msk [vmem:[%s211_s19 + $0x8] sm:$0xff] %vm438_vm3, %v437_v1 }
 0x199 PF: > { %s14_s15 = sadd.s32 1, %s589_s15  }
 0x19a   : > { %p11_p4 = scmp.ge.s32.totalorder %s14_s15, 4  }
 0x19c   :  { %13 = sbr.rel (!%p11_p4) target bundleno = 1 (0x1), region = 69 }

</bundles_post_ra>
